<compile_context>
chip_gen: v7x
topology: tpu7x:2x2x1
jax: 0.10.0
libtpu: 0.0.40
codegen_flags: <defaults>
</compile_context>

<pallas_src>
import math

import jax
import jax.numpy as jnp
from jax.experimental import pallas as pl
from jax.experimental.pallas import tpu as pltpu


def _round_up(x, m):
    return -(-x // m) * m


def _make_cin_kernel(num_layers, split_flags, xi_dims, embed_dim, btile, use_bf16):
    """Fused CIN kernel for a fixed (static) layer structure.

    xi_dims[l]: padded row count of layer l's output that feeds the final FC
    (the 8-aligned split point when split_flags[l], else the full padded C).
    """

    def kernel(*refs):
        x_ref = refs[0]
        o_ref = refs[-1]
        params = refs[1:-1]

        layer_w = [params[2 * l] for l in range(num_layers)]
        layer_b = [params[2 * l + 1] for l in range(num_layers)]
        fc_refs = params[2 * num_layers:3 * num_layers]
        fc_b_ref = params[3 * num_layers]

        lanes = x_ref.shape[1]                       # btile * embed_dim
        x0_f32 = x_ref[...]                          # (F, lanes), lane = e*btile + b
        f_dim = x0_f32.shape[0]
        x0 = x0_f32.astype(jnp.bfloat16) if use_bf16 else x0_f32
        h = x0

        # Running fc_w @ concat(feature_maps), still per (embed, batch) lane.
        v = jnp.zeros((1, lanes), jnp.float32)

        for l in range(num_layers):
            h_dim = h.shape[0]
            # Outer-product field interaction, built lane-dense:
            #   inter[f*H + h', :] = x0[f, :] * h[h', :]          -> (F*H, lanes)
            # H is a multiple of 8 for l >= 1, so the reshape is tile-aligned.
            inter = (x0[:, None, :] * h[None, :, :]).reshape(f_dim * h_dim, lanes)
            # One fused matmul per layer (both split halves share it); padded
            # rows/cols are zero so they contribute nothing.
            z = jnp.dot(layer_w[l][...], inter, preferred_element_type=jnp.float32)
            z = jnp.maximum(z + layer_b[l][...], 0.0)        # bias (C,1) broadcast
            xi = z[:xi_dims[l]]                              # 8-aligned sublane slice
            # Fused concat + FC: fold this layer's contribution immediately.
            v = v + jnp.dot(fc_refs[l][...], xi, preferred_element_type=jnp.float32)
            if l + 1 < num_layers:
                h_next = z[xi_dims[l]:] if split_flags[l] else z
                h = h_next.astype(jnp.bfloat16) if use_bf16 else h_next

        # Pool over embed_dim.  Lanes are embed-major within the tile
        # (lane = e*btile + b), so the per-batch sum is a short chain of XLU
        # lane rotations + VPU adds, and the answers land contiguously in
        # lanes [0, btile) -- a lane-dense output block, no transpose/gather.
        acc = v
        if embed_dim & (embed_dim - 1) == 0:          # power of two: doubling tree
            s = btile
            while s < lanes:
                acc = acc + pltpu.roll(acc, shift=lanes - s, axis=1)
                s *= 2
        else:                                         # general E: E-1 rotations
            for e in range(1, embed_dim):
                acc = acc + pltpu.roll(v, shift=lanes - e * btile, axis=1)

        out = acc[:, :btile] + fc_b_ref[...]          # (1, btile)
        o_ref[...] = out.reshape(1, 1, btile).astype(o_ref.dtype)

    return kernel


def _choose_btile(b_dim, f_dim, embed_dim, h_pads, c_pads, vmem_budget_bytes,
                  use_bf16):
    """Largest batch tile whose working set fits the VMEM budget."""
    # Alignment: (btile * E) % 128 == 0; keep btile a multiple of 8 as well.
    a = 128 // math.gcd(embed_dim, 128)
    align = a * 8 // math.gcd(a, 8)
    # Rough bytes of live VMEM per lane (per batch*embed column):
    #   x block (2x-buffered) + x0/h copies + materialized inter + z + v + slack
    inter_bytes = 2 if use_bf16 else 4
    h_max, c_max = max(h_pads), max(c_pads)
    per_lane = (4 * (2 * f_dim + f_dim + h_max + c_max + 4)
                + inter_bytes * f_dim * h_max)
    max_lanes = max(int(vmem_budget_bytes // per_lane), align * embed_dim)
    btile = max(align, (max_lanes // embed_dim) // align * align)
    # Never exceed the (aligned-up) batch ...
    btile = min(btile, _round_up(b_dim, align))
    # ... and keep >= 2 grid steps when the batch allows it (v7x has 2 TCs;
    # on v5e/v6e the extra ~0.35us grid step is noise).
    if _round_up(b_dim, align) >= 2 * align:
        btile = min(btile, _round_up(-(-b_dim // 2), align))
    return btile


def cin_forward(x, conv_ws, conv_bs, fc_w, fc_b, split_half=True,
                use_bf16=False, vmem_budget_bytes=32 * 1024 * 1024):
    """Fused CIN forward: x (B, F, E) -> (B, 1), matching the PyTorch module.

    Note: use_bf16=True needs looser tolerances than the 1e-4 used in __main__.
    Padded batch rows are wasted compute but are sliced off before returning.
    """
    b_dim, f_dim, e_dim = x.shape
    num_layers = len(conv_ws)

    # ---- host-side parameter packing ---------------------------------------
    # split_half is applied to the weights; output channels (both halves when
    # split) are zero-padded to multiples of 8 so the in-kernel split slices
    # and the interaction reshape stay sublane-tile aligned, and each layer is
    # a single matmul.
    w_dtype = jnp.bfloat16 if use_bf16 else jnp.float32
    fc_w = jnp.asarray(fc_w, jnp.float32)
    layer_ws, layer_bs, fc_chunks = [], [], []
    split_flags, xi_dims, h_pads, c_pads = [], [], [], []
    col = 0
    h_in, h_in_p = f_dim, f_dim
    flops_per_lane = 0
    for i in range(num_layers):
        w = jnp.asarray(conv_ws[i], jnp.float32)
        b = jnp.asarray(conv_bs[i], jnp.float32)
        c_out = w.shape[0]
        # Column reorder/pad for the padded previous-layer H: col = f*H_p + h.
        w = w.reshape(c_out, f_dim, h_in)
        if h_in_p != h_in:
            w = jnp.pad(w, ((0, 0), (0, 0), (0, h_in_p - h_in)))
        w = w.reshape(c_out, f_dim * h_in_p)

        is_split = split_half and i != num_layers - 1
        split_flags.append(is_split)
        if is_split:
            half, rest = c_out // 2, c_out - c_out // 2
            half_p, rest_p = _round_up(half, 8), _round_up(rest, 8)
            w_p = jnp.zeros((half_p + rest_p, f_dim * h_in_p), jnp.float32)
            w_p = w_p.at[:half].set(w[:half]).at[half_p:half_p + rest].set(w[half:])
            b_p = jnp.zeros((half_p + rest_p, 1), jnp.float32)
            b_p = b_p.at[:half, 0].set(b[:half]).at[half_p:half_p + rest, 0].set(b[half:])
            xi_real, xi_pad, h_next, h_next_p = half, half_p, rest, rest_p
        else:
            c_p = _round_up(c_out, 8)
            w_p = jnp.zeros((c_p, f_dim * h_in_p), jnp.float32).at[:c_out].set(w)
            b_p = jnp.zeros((c_p, 1), jnp.float32).at[:c_out, 0].set(b)
            xi_real, xi_pad, h_next, h_next_p = c_out, c_p, c_out, c_p

        layer_ws.append(w_p.astype(w_dtype))
        layer_bs.append(b_p)
        fc_c = jnp.zeros((1, xi_pad), jnp.float32)
        fc_c = fc_c.at[:, :xi_real].set(fc_w[:, col:col + xi_real])
        fc_chunks.append(fc_c)
        col += xi_real

        xi_dims.append(xi_pad)
        h_pads.append(h_in_p)
        c_pads.append(int(w_p.shape[0]))
        flops_per_lane += f_dim * h_in_p                      # interaction
        flops_per_lane += 2 * int(w_p.shape[0] * w_p.shape[1])  # conv matmul
        flops_per_lane += 2 * xi_pad                          # fused FC chunk
        h_in, h_in_p = h_next, h_next_p
    fc_b2 = jnp.asarray(fc_b, jnp.float32).reshape(1, 1)

    # ---- batch tiling (VMEM-budget sized, >=2 tiles for v7x megacore) -------
    btile = _choose_btile(b_dim, f_dim, e_dim, h_pads, c_pads,
                          vmem_budget_bytes, use_bf16)
    num_tiles = -(-b_dim // btile)
    b_pad = num_tiles * btile
    lanes = btile * e_dim
    flops = flops_per_lane * b_pad * e_dim

    # ---- lane-dense activation layout ---------------------------------------
    # (F, b_pad*E); within a tile, lane = e*btile + b (embed-major) so the
    # final embed-sum lands contiguously in lanes [0, btile).
    # TODO(synk): fuse this transpose/pad into the pallas_call operand read
    # (allow_input_fusion / in-kernel relayout) to avoid one extra HBM round
    # trip on x for large batches.
    x_p = jnp.asarray(x)
    if b_pad != b_dim:
        x_p = jnp.pad(x_p, ((0, b_pad - b_dim), (0, 0), (0, 0)))
    x_l = (x_p.reshape(num_tiles, btile, f_dim, e_dim)
               .transpose(2, 0, 3, 1)              # (F, tiles, E, btile)
               .reshape(f_dim, b_pad * e_dim))

    param_inputs = []
    for wl, bl in zip(layer_ws, layer_bs):
        param_inputs += [wl, bl]
    param_inputs += fc_chunks + [fc_b2]
    inputs = [x_l] + param_inputs

    in_specs = [pl.BlockSpec((f_dim, lanes), lambda i: (0, i))]
    for arr in param_inputs:
        # Parameters: full-array block, constant index map, single-buffered
        # (they never change block index; a second buffer is pure VMEM waste).
        in_specs.append(pl.BlockSpec(arr.shape, lambda i: (0, 0),
                                     pipeline_mode=pl.Buffered(1)))

    bytes_accessed = (sum(int(a.size) * a.dtype.itemsize for a in inputs)
                      + b_pad * x.dtype.itemsize)

    kernel = _make_cin_kernel(num_layers, tuple(split_flags), tuple(xi_dims),
                              e_dim, btile, use_bf16)

    out = pl.pallas_call(
        kernel,
        out_shape=jax.ShapeDtypeStruct((num_tiles, 1, btile), x.dtype),
        grid=(num_tiles,),
        in_specs=in_specs,
        out_specs=pl.BlockSpec((1, 1, btile), lambda i: (i, 0, 0)),
        compiler_params=pltpu.CompilerParams(
            dimension_semantics=("parallel",),
            vmem_limit_bytes=48 * 1024 * 1024),
        cost_estimate=pl.CostEstimate(flops=int(flops), transcendentals=0,
                                      bytes_accessed=int(bytes_accessed)),
    )(*inputs)
    return out.reshape(b_pad, 1)[:b_dim]


def cin_forward_ref(x, conv_ws, conv_bs, fc_w, fc_b, split_half=True):
    """Pure-JAX reference (mirrors the PyTorch forward exactly)."""
    num_layers = len(conv_ws)
    x0 = x[:, :, None, :]                    # (B, F, 1, E)
    h = x
    xs = []
    for i in range(num_layers):
        inter = x0 * h[:, None, :, :]        # (B, F, H, E)
        b, f0, fin, e = inter.shape
        inter = inter.reshape(b, f0 * fin, e)
        z = jnp.einsum('bce,oc->boe', inter, conv_ws[i]) + conv_bs[i][None, :, None]
        z = jnp.maximum(z, 0.0)
        if split_half and i != num_layers - 1:
            half = z.shape[1] // 2
            xi, h = z[:, :half, :], z[:, half:, :]
        else:
            xi = h = z
        xs.append(xi)
    cat = jnp.concatenate(xs, axis=1)
    return jnp.sum(cat, axis=2) @ fc_w.T + fc_b


if __name__ == "__main__":
    # x is (batch, num_fields, embed_dim).  B=32, E=16 -> btile=16 (two
    # "parallel" batch tiles of 256 lanes each).
    B, F, E = 32, 4, 16
    cross_layer_sizes = (8, 6)
    split_half = True

    key = jax.random.PRNGKey(0)
    kx, *kw = jax.random.split(key, 2 + 2 * len(cross_layer_sizes) + 2)
    x = jax.random.normal(kx, (B, F, E), dtype=jnp.float32)

    # Deterministic parameter init (shapes follow the PyTorch __init__).
    conv_ws, conv_bs = [], []
    prev_dim, fc_input_dim = F, 0
    ki = 0
    num_layers = len(cross_layer_sizes)
    for i in range(num_layers):
        c_out = cross_layer_sizes[i]
        c_in = F * prev_dim
        w = 0.1 * jax.random.normal(kw[ki], (c_out, c_in), dtype=jnp.float32); ki += 1
        b = 0.1 * jax.random.normal(kw[ki], (c_out,), dtype=jnp.float32); ki += 1
        conv_ws.append(w)
        conv_bs.append(b)
        if split_half and i != num_layers - 1:
            c_out //= 2
        prev_dim = c_out
        fc_input_dim += prev_dim
    fc_w = 0.1 * jax.random.normal(kw[ki], (1, fc_input_dim), dtype=jnp.float32); ki += 1
    fc_b = 0.1 * jax.random.normal(kw[ki], (1,), dtype=jnp.float32)

    out = cin_forward(x, conv_ws, conv_bs, fc_w, fc_b, split_half)
    jax.block_until_ready(out)

    ref = cin_forward_ref(x, conv_ws, conv_bs, fc_w, fc_b, split_half)
    assert out.shape == (B, 1), out.shape
    assert jnp.allclose(out, ref, atol=1e-4, rtol=1e-4), (out, ref)

    print("KERNEL_OK")
</pallas_src>

<mosaic_0001>
module attributes {stable_mosaic.version = 11 : i64} {
  func.func @kernel(%arg0: i32, %arg1: memref<4x256xf32, #tpu.memory_space<vmem>>, %arg2: memref<16x16xf32, #tpu.memory_space<vmem>>, %arg3: memref<16x1xf32, #tpu.memory_space<vmem>>, %arg4: memref<8x32xf32, #tpu.memory_space<vmem>>, %arg5: memref<8x1xf32, #tpu.memory_space<vmem>>, %arg6: memref<1x8xf32, #tpu.memory_space<vmem>>, %arg7: memref<1x8xf32, #tpu.memory_space<vmem>>, %arg8: memref<1x1xf32, #tpu.memory_space<vmem>>, %arg9: memref<1x1x16xf32, #tpu.memory_space<vmem>>) attributes {dimension_semantics = [#tpu.dimension_semantics<parallel>], iteration_bounds = array<i64: 2>, scalar_prefetch = 0 : i64, scratch_operands = 0 : i64, tpu.core_type = #tpu.core_type<tc>, window_params = [{transform_indices = @transform_0, window_bounds = array<i64: 4, 256>}, {pipeline_mode = #tpu.pipeline_mode<synchronous>, transform_indices = @transform_1, window_bounds = array<i64: 16, 16>}, {pipeline_mode = #tpu.pipeline_mode<synchronous>, transform_indices = @transform_2, window_bounds = array<i64: 16, 1>}, {pipeline_mode = #tpu.pipeline_mode<synchronous>, transform_indices = @transform_3, window_bounds = array<i64: 8, 32>}, {pipeline_mode = #tpu.pipeline_mode<synchronous>, transform_indices = @transform_4, window_bounds = array<i64: 8, 1>}, {pipeline_mode = #tpu.pipeline_mode<synchronous>, transform_indices = @transform_5, window_bounds = array<i64: 1, 8>}, {pipeline_mode = #tpu.pipeline_mode<synchronous>, transform_indices = @transform_6, window_bounds = array<i64: 1, 8>}, {pipeline_mode = #tpu.pipeline_mode<synchronous>, transform_indices = @transform_7, window_bounds = array<i64: 1, 1>}, {transform_indices = @transform_8, window_bounds = array<i64: 1, 1, 16>}]} {
    %c0 = arith.constant 0 : index
    %c0_0 = arith.constant 0 : index
    %0 = vector.load %arg1[%c0, %c0_0] : memref<4x256xf32, #tpu.memory_space<vmem>>, vector<4x256xf32>
    %cst = arith.constant 0.000000e+00 : f32
    %1 = vector.broadcast %cst : f32 to vector<1x256xf32>
    %2 = vector.shape_cast %0 : vector<4x256xf32> to vector<4x1x256xf32>
    %3 = vector.shape_cast %0 : vector<4x256xf32> to vector<1x4x256xf32>
    %4 = vector.broadcast %2 : vector<4x1x256xf32> to vector<4x4x256xf32>
    %5 = vector.broadcast %3 : vector<1x4x256xf32> to vector<4x4x256xf32>
    %6 = arith.mulf %4, %5 : vector<4x4x256xf32>
    %7 = vector.shape_cast %6 : vector<4x4x256xf32> to vector<16x256xf32>
    %c0_1 = arith.constant 0 : index
    %c0_2 = arith.constant 0 : index
    %8 = vector.load %arg2[%c0_1, %c0_2] : memref<16x16xf32, #tpu.memory_space<vmem>>, vector<16x16xf32>
    %cst_3 = arith.constant dense<0.000000e+00> : vector<16x256xf32>
    %9 = tpu.matmul %8, %7, %cst_3 {dimension_numbers = #tpu.dot_dimension_numbers<[1], [0], [0], [1], [0, 0, 1, 1], [], []>} : vector<16x16xf32>, vector<16x256xf32>, vector<16x256xf32> -> vector<16x256xf32>
    %c0_4 = arith.constant 0 : index
    %c0_5 = arith.constant 0 : index
    %10 = vector.load %arg3[%c0_4, %c0_5] : memref<16x1xf32, #tpu.memory_space<vmem>>, vector<16x1xf32>
    %11 = vector.broadcast %10 : vector<16x1xf32> to vector<16x256xf32>
    %12 = arith.addf %9, %11 : vector<16x256xf32>
    %cst_6 = arith.constant 0.000000e+00 : f32
    %13 = vector.broadcast %cst_6 : f32 to vector<16x256xf32>
    %14 = arith.maximumf %12, %13 : vector<16x256xf32>
    %15 = vector.extract_strided_slice %14 {offsets = [0, 0], sizes = [8, 256], strides = [1, 1]} : vector<16x256xf32> to vector<8x256xf32>
    %c0_7 = arith.constant 0 : index
    %c0_8 = arith.constant 0 : index
    %16 = vector.load %arg6[%c0_7, %c0_8] : memref<1x8xf32, #tpu.memory_space<vmem>>, vector<1x8xf32>
    %cst_9 = arith.constant dense<0.000000e+00> : vector<1x256xf32>
    %17 = tpu.matmul %16, %15, %cst_9 {dimension_numbers = #tpu.dot_dimension_numbers<[1], [0], [0], [1], [0, 0, 1, 1], [], []>} : vector<1x8xf32>, vector<8x256xf32>, vector<1x256xf32> -> vector<1x256xf32>
    %18 = arith.addf %1, %17 : vector<1x256xf32>
    %19 = vector.extract_strided_slice %14 {offsets = [8, 0], sizes = [8, 256], strides = [1, 1]} : vector<16x256xf32> to vector<8x256xf32>
    %20 = vector.shape_cast %0 : vector<4x256xf32> to vector<4x1x256xf32>
    %21 = vector.shape_cast %19 : vector<8x256xf32> to vector<1x8x256xf32>
    %22 = vector.broadcast %20 : vector<4x1x256xf32> to vector<4x8x256xf32>
    %23 = vector.broadcast %21 : vector<1x8x256xf32> to vector<4x8x256xf32>
    %24 = arith.mulf %22, %23 : vector<4x8x256xf32>
    %25 = vector.shape_cast %24 : vector<4x8x256xf32> to vector<32x256xf32>
    %c0_10 = arith.constant 0 : index
    %c0_11 = arith.constant 0 : index
    %26 = vector.load %arg4[%c0_10, %c0_11] : memref<8x32xf32, #tpu.memory_space<vmem>>, vector<8x32xf32>
    %cst_12 = arith.constant dense<0.000000e+00> : vector<8x256xf32>
    %27 = tpu.matmul %26, %25, %cst_12 {dimension_numbers = #tpu.dot_dimension_numbers<[1], [0], [0], [1], [0, 0, 1, 1], [], []>} : vector<8x32xf32>, vector<32x256xf32>, vector<8x256xf32> -> vector<8x256xf32>
    %c0_13 = arith.constant 0 : index
    %c0_14 = arith.constant 0 : index
    %28 = vector.load %arg5[%c0_13, %c0_14] : memref<8x1xf32, #tpu.memory_space<vmem>>, vector<8x1xf32>
    %29 = vector.broadcast %28 : vector<8x1xf32> to vector<8x256xf32>
    %30 = arith.addf %27, %29 : vector<8x256xf32>
    %cst_15 = arith.constant 0.000000e+00 : f32
    %31 = vector.broadcast %cst_15 : f32 to vector<8x256xf32>
    %32 = arith.maximumf %30, %31 : vector<8x256xf32>
    %c0_16 = arith.constant 0 : index
    %c0_17 = arith.constant 0 : index
    %33 = vector.load %arg7[%c0_16, %c0_17] : memref<1x8xf32, #tpu.memory_space<vmem>>, vector<1x8xf32>
    %cst_18 = arith.constant dense<0.000000e+00> : vector<1x256xf32>
    %34 = tpu.matmul %33, %32, %cst_18 {dimension_numbers = #tpu.dot_dimension_numbers<[1], [0], [0], [1], [0, 0, 1, 1], [], []>} : vector<1x8xf32>, vector<8x256xf32>, vector<1x256xf32> -> vector<1x256xf32>
    %35 = arith.addf %18, %34 : vector<1x256xf32>
    %c240_i32 = arith.constant 240 : i32
    %36 = tpu.dynamic_rotate %35 by %c240_i32 dim 1 : vector<1x256xf32>, i32 -> vector<1x256xf32>
    %37 = arith.addf %35, %36 : vector<1x256xf32>
    %c224_i32 = arith.constant 224 : i32
    %38 = tpu.dynamic_rotate %37 by %c224_i32 dim 1 : vector<1x256xf32>, i32 -> vector<1x256xf32>
    %39 = arith.addf %37, %38 : vector<1x256xf32>
    %c192_i32 = arith.constant 192 : i32
    %40 = tpu.dynamic_rotate %39 by %c192_i32 dim 1 : vector<1x256xf32>, i32 -> vector<1x256xf32>
    %41 = arith.addf %39, %40 : vector<1x256xf32>
    %c128_i32 = arith.constant 128 : i32
    %42 = tpu.dynamic_rotate %41 by %c128_i32 dim 1 : vector<1x256xf32>, i32 -> vector<1x256xf32>
    %43 = arith.addf %41, %42 : vector<1x256xf32>
    %44 = vector.extract_strided_slice %43 {offsets = [0, 0], sizes = [1, 16], strides = [1, 1]} : vector<1x256xf32> to vector<1x16xf32>
    %c0_19 = arith.constant 0 : index
    %c0_20 = arith.constant 0 : index
    %45 = vector.load %arg8[%c0_19, %c0_20] : memref<1x1xf32, #tpu.memory_space<vmem>>, vector<1x1xf32>
    %46 = vector.broadcast %45 : vector<1x1xf32> to vector<1x16xf32>
    %47 = arith.addf %44, %46 : vector<1x16xf32>
    %48 = vector.shape_cast %47 : vector<1x16xf32> to vector<1x1x16xf32>
    %c0_21 = arith.constant 0 : index
    %c0_22 = arith.constant 0 : index
    %c0_23 = arith.constant 0 : index
    %49 = vector.load %arg9[%c0_21, %c0_22, %c0_23] : memref<1x1x16xf32, #tpu.memory_space<vmem>>, vector<1x1x16xf32>
    tpu.vector_store %arg9[%c0_21, %c0_22, %c0_23], %48 {strides = array<i32>} : memref<1x1x16xf32, #tpu.memory_space<vmem>>, vector<1x1x16xf32>,
    return
  }
  func.func @transform_0(%arg0: i32) -> (i32, i32) {
    %c0_i32 = arith.constant 0 : i32
    %c0_i32_0 = arith.constant 0 : i32
    return %c0_i32, %arg0 : i32, i32
  }
  func.func @transform_1(%arg0: i32) -> (i32, i32) {
    %c0_i32 = arith.constant 0 : i32
    %c0_i32_0 = arith.constant 0 : i32
    %c0_i32_1 = arith.constant 0 : i32
    return %c0_i32, %c0_i32_0 : i32, i32
  }
  func.func @transform_2(%arg0: i32) -> (i32, i32) {
    %c0_i32 = arith.constant 0 : i32
    %c0_i32_0 = arith.constant 0 : i32
    %c0_i32_1 = arith.constant 0 : i32
    return %c0_i32, %c0_i32_0 : i32, i32
  }
  func.func @transform_3(%arg0: i32) -> (i32, i32) {
    %c0_i32 = arith.constant 0 : i32
    %c0_i32_0 = arith.constant 0 : i32
    %c0_i32_1 = arith.constant 0 : i32
    return %c0_i32, %c0_i32_0 : i32, i32
  }
  func.func @transform_4(%arg0: i32) -> (i32, i32) {
    %c0_i32 = arith.constant 0 : i32
    %c0_i32_0 = arith.constant 0 : i32
    %c0_i32_1 = arith.constant 0 : i32
    return %c0_i32, %c0_i32_0 : i32, i32
  }
  func.func @transform_5(%arg0: i32) -> (i32, i32) {
    %c0_i32 = arith.constant 0 : i32
    %c0_i32_0 = arith.constant 0 : i32
    %c0_i32_1 = arith.constant 0 : i32
    return %c0_i32, %c0_i32_0 : i32, i32
  }
  func.func @transform_6(%arg0: i32) -> (i32, i32) {
    %c0_i32 = arith.constant 0 : i32
    %c0_i32_0 = arith.constant 0 : i32
    %c0_i32_1 = arith.constant 0 : i32
    return %c0_i32, %c0_i32_0 : i32, i32
  }
  func.func @transform_7(%arg0: i32) -> (i32, i32) {
    %c0_i32 = arith.constant 0 : i32
    %c0_i32_0 = arith.constant 0 : i32
    %c0_i32_1 = arith.constant 0 : i32
    return %c0_i32, %c0_i32_0 : i32, i32
  }
  func.func @transform_8(%arg0: i32) -> (i32, i32, i32) {
    %c0_i32 = arith.constant 0 : i32
    %c0_i32_0 = arith.constant 0 : i32
    %c0_i32_1 = arith.constant 0 : i32
    return %arg0, %c0_i32, %c0_i32_0 : i32, i32, i32
  }
}

</mosaic_0001>

<bundles_post_ra>
// kernel: tpu_custom_call.1
= control target key start
LH: loop header
LB: loop body
LE: loop exit
PB: predicated region body
PF: predicated region fallthrough
CT: control target
= control target key end

     0   :  { %s1195_s0 = inlined_call_operand.vmem [shape: f32[4,512], index: 0, kind: input, shape index: {}]   ;;  %s1196_s1 = inlined_call_operand.vmem [shape: f32[16,16], index: 1, kind: input, shape index: {}]   ;;  %s1197_s2 = inlined_call_operand.vmem [shape: f32[16,1], index: 2, kind: input, shape index: {}]   ;;  %s1198_s3 = inlined_call_operand.vmem [shape: f32[8,32], index: 3, kind: input, shape index: {}]   ;;  %s1199_s4 = inlined_call_operand.vmem [shape: f32[8,1], index: 4, kind: input, shape index: {}]   ;;  %s1200_s5 = inlined_call_operand.vmem [shape: f32[1,8], index: 5, kind: input, shape index: {}]   ;;  %s1201_s6 = inlined_call_operand.vmem [shape: f32[1,8], index: 6, kind: input, shape index: {}]   ;;  %s1202_s7 = inlined_call_operand.<no memory space> [shape: f32[1,1], index: 7, kind: input, shape index: {}]   ;;  %s1203_s8 = inlined_call_operand.hbm [shape: f32[2,1,16], index: 8, kind: output, shape index: {}]  }
   0x1   :  { %v13_v0 = vstv %s1202_s7 }
   0x2   :  { %14 = vst [vmem:[#allocation2] sm:$0x1] %v13_v0 }
   0x3   :  { %15 = vsyncpa [#allocation4], 0 }
   0x4   :  { %17 = vsyncpa [#allocation4 + $0x1], 0  ;;  %s1058_s29 = smov 0   ;;  %s1060_s30 = smov 0  }
   0x5   :  { %s1062_s9 = smov 0   ;;  %s1064_s10 = smov 0  }
   0x6 LB: > { %s1079_s7 = sadd.s32 4294967295, %s1001_s10   ;;  %s859_s11 = sadd.s32 4294967294, %s1001_s10   ;;  %s1001_s10 = sphi %s1064_s10, %s1209_s10   ;;  %s997_s9 = sphi %s1062_s9, %s1208_s9   ;;  %s993_s30 = sphi %s1060_s30, %s1207_s30   ;;  %s989_s29 = sphi %s1058_s29, %s1206_s29  }
   0x7   : > { %s1083_s12 = sadd.s32 1, %s1001_s10   ;;  %s203_s13 = sadd.s32 1, %s997_s9 }
   0x8   : > { %s200_s14 = ssub.s32 %s1001_s10, %s1083_s12  ;;  %p213_p0 = scmp.ne.s32.totalorder %s997_s9, %s993_s30 }
   0x9   : > { %p201_p1 = scmp.eq.s32.totalorder %s200_s14, 0  ;;  %p214_p2 = scmp.eq.s32.totalorder %s1079_s7, 1 }
   0xa   : > { %p219_p3 = scmp.ne.s32.totalorder %s993_s30, %s989_s29  ;;  %p220_p4 = scmp.eq.s32.totalorder %s859_s11, 1 }
   0xb   : > { %s1094_s15 = scalar_select %p201_p1, %s997_s9, %s203_s13  }
   0xc   : > { %p1096_p5 = por %p214_p2, %p213_p0  ;;  %p1100_p6 = por %p220_p4, %p219_p3 }
   0xd   : > { %p862_p7 = scmp.ge.s32.totalorder %s1001_s10, 1  ;;  %p268_p8 = scmp.lt.s32.totalorder %s1001_s10, 3 }
   0xf   : > { %p269_p9 = pnand %p862_p7, %p268_p8 }
  0x10   : > { %s863_s18 = sshll.u32 (!%p269_p9), %s1079_s7, 1  ;;  %v312_v1 = vlaneseq (!%p269_p9)  ;;  %v1003_v2 = vmov (!%p269_p9), 1966171168   ;;  %v1004_v4 = vmov (!%p269_p9), 0.0   ;;  %v397_v5 = vld [vmem:[%s1197_s2] sm:$0xff] (!%p269_p9)  ;;  %v398_v6 = vld [vmem:[%s1197_s2 + $0x8] sm:$0xff] (!%p269_p9) }
  0x11   : > { %272 = sbr.rel (%p269_p9) target bundleno = 1093 (0x445), region = 52  ;;  %p302_p10 = scmp.lt.s32.totalorder (!%p269_p9), %s863_s18, 3  ;;  %v310_v3 = vunpack.c.l.s4 (!%p269_p9), %v1003_v2  ;;  %488 = vmatprep.mubr.f32.mxu1 (!%p269_p9), %v1004_v4  ;;  %667 = vmatprep.mubr.f32.mxu0 (!%p269_p9), %v1004_v4  ;;  %v1005_v8 = vmov (!%p269_p9), 0   ;;  %v515_v10 = vld [vmem:[%s1199_s4] sm:$0xff] (!%p269_p9)  ;;  %vm417_vm0 = vcmask (!%p269_p9), 130048   ;;  %v396_v45 = vld [vmem:[%s1196_s1 + $0x8] sm:$0xff] (!%p269_p9) }
  0x12   : > { %v313_v7 = vshrl.u32 (!%p269_p9), %v312_v1, 7  ;;  %937 = vset.pattern.permute.xlu1 (!%p269_p9), %v1005_v8  ;;  %936 = vset.pattern.permute.xlu0 (!%p269_p9), %v1005_v8  ;;  %v395_v44 = vld [vmem:[%s1196_s1] sm:$0xff] (!%p269_p9)  ;;  %vm521_vm1 = vcmask (!%p269_p9), 261120   ;;  %vm599_vm2 = vcmask (!%p269_p9), 64512   ;;  %s1007_s26 = smov (!%p269_p9), 96   ;;  %s1008_s27 = smov (!%p269_p9), 64  }
  0x13   : > { %v311_v9 = vunpack.c.0.s8 (!%p269_p9), %v310_v3  ;;  %401 = vperm.xlu1 (!%p269_p9), %937, %v397_v5   ;;  %406 = vperm.xlu0 (!%p269_p9), %936, %v398_v6   ;;  %v514_v5 = vld [vmem:[%s1198_s3] sm:$0xff] (!%p269_p9)  ;;  %s874_s11 = sshll.u32 (!%p269_p9), %s1079_s7, 4  ;;  %vm789_vm6 = vcmask (!%p269_p9), 122880   ;;  %s1009_s22 = smov (!%p269_p9), [#allocation3]  }
  0x14   : > { %v339_v14 = vsub.s32 (!%p269_p9), 1, %v313_v7  ;;  %v1122_v15 = vsub.s32 (!%p269_p9), 0, %v313_v7  ;;  %s1153_s20 = scalar_lea.hbm (!%p269_p9), %s1203_s8, %s874_s11  ;;  %s943_s23 = sshll.u32 (!%p269_p9), %s1009_s22, 4  ;;  %s944_s23 = int_to_ptr.vmem [resolvable:$false] %s943_s23 }
  0x15   : > { %v314_v11 = vsub.s32 (!%p269_p9), %v311_v9, %v313_v7  ;;  %s945_s24 = scalar_lea.vmem (!%p269_p9), %s944_s23, 32 }
  0x17   : > { %518 = vperm.xlu0 (!%p269_p9), %936, %v515_v10  }
  0x18   : > { %s1211_s18 = smov (!%p302_p10, %s863_s18), 3 }
  0x19   : > { %s864_s25 = sshll.u32 %s1211_s18, 2 }
  0x1a   : > { %s305_s28 = scalar_lea.vmem %s1195_s0, %s864_s25  ;;  %s1006_s25 = smov 112  }
  0x1b   : > { %v307_v12 = vld [vmem:[%s305_s28] sm:$0xff]  ;;  %s299_s28 = sand.u32 1, %s993_s30  }
  0x1c   : > { %v315_v13 = vrot.slane %v307_v12, %v314_v11  ;;  %v373_v18 = vcombine.high %v307_v12, %v307_v12  ;;  %s300_s13 = scalar_lea.vmem [#allocation3], %s299_s28  ;;  %s792_s21 = scalar_lea.sflag [#allocation4], %s299_s28 }
  0x1d   : > { %s804_s14 = sshll.u32 %s300_s13, 4  ;;  %s1155_s14 = int_to_ptr.vmem [resolvable:$true] %s804_s14 }
  0x1e   : > { %v316_v16 = vcombine.high %v315_v13, %v315_v13  ;;  %v323_v17 = vrot.slane %v315_v13, %v314_v11  ;;  %s939_s7 = scalar_lea.vmem %s1155_s14, 16  ;;  %p946_p0 = scmp.lt.s32.totalorder %s1155_s14, %s944_s23 }
  0x1f   : > { %p940_p11 = scmp.ne.s32.totalorder %s1155_s14, %s939_s7  ;;  %p947_p1 = scmp.lt.s32.totalorder %s945_s24, %s939_s7 }
  0x20   : > { %v330_v19 = vrot.slane %v316_v16, %v314_v11  ;;  %v331_v20 = vcombine.high %v323_v17, %v323_v17  ;;  %v340_v21 = vrot.slane %v323_v17, %v339_v14  ;;  %v336_v22 = vrot.slane %v323_v17, %v1122_v15  ;;  %v598_v17 = vld [vmem:[%s1201_s6] sm:$0x1] }
  0x21   : > { %p941_p12 = pnand %p940_p11, %p1096_p5  ;;  %p948_p2 = por %p947_p1, %p946_p0 }
  0x22   : > { %v332_v23 = vcombine.high %v330_v19, %v330_v19  ;;  %v348_v24 = vrot.slane %v330_v19, %v339_v14  ;;  %v356_v25 = vrot.slane %v331_v20, %v339_v14  ;;  %v376_v26 = vmul.f32 %v373_v18, %v340_v21 }
  0x23   : > { %v344_v27 = vrot.slane %v330_v19, %v1122_v15  ;;  %v352_v28 = vrot.slane %v331_v20, %v1122_v15  ;;  %v375_v29 = vmul.f32 %v336_v22, %v307_v12  ;;  %v505_v20 = vld [vmem:[%s1200_s5] sm:$0x1]  ;;  %p942_p13 = pneg %p941_p12 }
  0x24   : > { %v364_v30 = vrot.slane %v332_v23, %v339_v14  ;;  %v378_v31 = vmul.f32 %v373_v18, %v348_v24  ;;  %v380_v32 = vmul.f32 %v373_v18, %v356_v25  ;;  %v360_v33 = vrot.slane %v332_v23, %v1122_v15 }
  0x25   : > { %v377_v34 = vmul.f32 %v344_v27, %v307_v12  ;;  %v379_v35 = vmul.f32 %v352_v28, %v307_v12  ;;  %v753_v23 = vand.u32 127, %v312_v1  ;;  %p949_p3 = pnand %p948_p2, %p942_p13 }
  0x26   : > { %v382_v36 = vmul.f32 %v373_v18, %v364_v30  ;;  %v866_v37 = vcombine.low %v376_v26, %v378_v31  ;;  %v381_v38 = vmul.f32 %v360_v33, %v307_v12 }
  0x27   : > { %v865_v39 = vcombine.low %v375_v29, %v377_v34  ;;  %vm754_vm3 = vcmp.lt.s32.totalorder %v753_v23, 112  ;;  %vm763_vm4 = vcmp.lt.s32.totalorder %v753_v23, 96  ;;  %vm772_vm5 = vcmp.lt.s32.totalorder %v753_v23, 64 }
  0x28   : > { %v868_v40 = vcombine.low %v380_v32, %v382_v36  ;;  %v867_v41 = vcombine.low %v379_v35, %v381_v38 }
  0x2a   : > { %v877_v42 = vpack.c.bf16 %v868_v40, %v866_v37  ;;  %v879_v43 = vpack.c.bf16 %v867_v41, %v865_v39 }
  0x2c   : > { %878 = vmatprep.subr.bf16.mxu1 %v877_v42 }
  0x2d   : > { %880 = vmatpush1.bf16.msra.mxu1 %v879_v43 }
  0x30   : > { %869 = vmatmul.mubr.msk.f32.vlgmr.msra.gmra.mrb[0].mxu1 %vm417_vm0, %v395_v44 }
  0x31   : > { %494 = vmatprep.mubr.f32.mxu1 %v1004_v4 }
  0x34   : > { %870 = vmatmul.mubr.msk.f32.gmra.mrb[2].mxu1 %vm417_vm0, %v396_v45 }
  0x35   : > { %589 = vmatprep.mubr.f32.mxu1 %v1004_v4 }
  0x92   : > { %v407_v48 = vpop.permute.xlu0 %406  ;;  %v402_v6 = vpop.permute.xlu1 %401 }
  0x96   : > { %v519_v7 = vpop.permute.xlu0 %518 }
 0x103   : > { %v490_v46 = vpop.f32.mrb[0].mxu1 }
 0x104   : > { %v492_v47 = vpop.f32.mrb[1].mxu1  ;;  %v491_v13 = vadd.f32 %v490_v46, %v402_v6 }
 0x105   : > { %v493_v11 = vadd.f32 %v492_v47, %v402_v6 }
 0x106   : > { %v501_v19 = vmax.f32 %v491_v13, 0.0 }
 0x107   : > { %v496_v49 = vpop.f32.mrb[2].mxu1  ;;  %v502_v18 = vmax.f32 %v493_v11, 0.0 }
 0x108   : > { %v497_v50 = vadd.f32 %v496_v49, %v407_v48  ;;  %v498_v51 = vpop.f32.mrb[3].mxu1 }
 0x109   : > { %v499_v52 = vadd.f32 %v498_v51, %v407_v48 }
 0x10a   : > { %v503_v53 = vmax.f32 %v497_v50, 0.0 }
 0x10b   : > { %v504_v54 = vmax.f32 %v499_v52, 0.0 }
 0x10c   : > { %v506_v55 = vmul.f32 %v503_v53, %v336_v22  ;;  %v508_v56 = vmul.f32 %v503_v53, %v344_v27  ;;  %v510_v62 = vmul.f32 %v503_v53, %v352_v28  ;;  %v512_v63 = vmul.f32 %v503_v53, %v360_v33 }
 0x10d   : > { %v507_v57 = vmul.f32 %v504_v54, %v340_v21  ;;  %v509_v58 = vmul.f32 %v504_v54, %v348_v24  ;;  %v511_v59 = vmul.f32 %v504_v54, %v356_v25  ;;  %v513_v60 = vmul.f32 %v504_v54, %v364_v30 }
 0x10e   : > { %v883_v0 = vpack.c.bf16 %v508_v56, %v506_v55  ;;  %v887_v3 = vpack.c.bf16 %v512_v63, %v510_v62 }
 0x10f   : > { %v881_v61 = vpack.c.bf16 %v509_v58, %v507_v57  ;;  %v885_v2 = vpack.c.bf16 %v513_v60, %v511_v59 }
 0x111   : > { %882 = vmatprep.subr.bf16.mxu1 %v881_v61 }
 0x112   : > { %884 = vmatpush1.bf16.msra.mxu1 %v883_v0 }
 0x113   : > { %886 = vmatprep.subr.bf16.mxu1 %v885_v2 }
 0x116   : > { %888 = vmatpush1.bf16.msra.mxu1 %v887_v3 }
 0x119   : > { %871 = vmatmul.mubr.msk.f32.vlgmr.msra.gmra.mrb[4].mxu1 %vm521_vm1, %v514_v5 }
 0x1ec   : > { %v591_v8 = vpop.f32.mrb[4].mxu1 }
 0x1ed   : > { %v592_v9 = vadd.f32 %v591_v8, %v519_v7  ;;  %v593_v10 = vpop.f32.mrb[5].mxu1 }
 0x1ee   : > { %v594_v12 = vadd.f32 %v593_v10, %v519_v7 }
 0x1ef   : > { %v596_v16 = vmax.f32 %v592_v9, 0.0 }
 0x1f0   : > { %v597_v14 = vmax.f32 %v594_v12, 0.0 }
 0x1f2   : > { %603 = vmatprep.subr.mxu0 %v597_v14 }
 0x1f3   : > { %604 = vmatpush1.msra.mxu0 %v596_v16 }
 0x1f4   : > { %872 = vmatmul.mubr.msk.f32.vlgmr.msra.gmra.mrb[0].mxu0 %vm599_vm2, %v598_v17  ;;  %677 = vmatprep.subr.mxu0 %v502_v18 }
 0x1f5   : > { %678 = vmatpush1.msra.mxu0 %v501_v19  ;;  %741 = vmatprep.mubr.f32.mxu0 %v1004_v4  ;;  %v778_v4 = vld [vmem:[#allocation2] sm:$0x1] }
 0x1fc   : > { %873 = vmatmul.mubr.msk.f32.vlgmr.msra.gmra.mrb[0].mxu0 %vm599_vm2, %v505_v20 }
 0x2cf   : > { %v743_v21 = vpop.f32.mrb[0].mxu0 }
 0x2d0   : > { %748 = vrot.lane.b32.xlu1 %v743_v21, %s1006_s25  ;;  %v745_v22 = vpop.f32.mrb[1].mxu0 }
 0x2d1   : > { %750 = vrot.lane.b32.xlu0 %v745_v22, %s1006_s25 }
 0x342   : > { %v749_v24 = vpop.permute.xlu1 %748 }
 0x343   : > { %v751_v25 = vpop.permute.xlu0 %750 }
 0x344   : > { %v755_v26 = vsel %vm754_vm3, %v749_v24, %v751_v25  ;;  %v756_v27 = vsel %vm754_vm3, %v751_v25, %v749_v24 }
 0x345   : > { %v757_v28 = vadd.f32 %v755_v26, %v743_v21  ;;  %v758_v29 = vadd.f32 %v756_v27, %v745_v22 }
 0x347   : > { %761 = vrot.lane.b32.xlu0 %v758_v29, %s1007_s26  ;;  %759 = vrot.lane.b32.xlu1 %v757_v28, %s1007_s26 }
 0x34b   : > { %781 = vperm.xlu1 %937, %v778_v4  }
 0x3b9   : > { %v762_v30 = vpop.permute.xlu0 %761  ;;  %v760_v31 = vpop.permute.xlu1 %759 }
 0x3ba   : > { %v764_v32 = vsel %vm763_vm4, %v760_v31, %v762_v30  ;;  %v765_v33 = vsel %vm763_vm4, %v762_v30, %v760_v31 }
 0x3bb   : > { %v766_v1 = vadd.f32 %v764_v32, %v757_v28  ;;  %v767_v34 = vadd.f32 %v765_v33, %v758_v29 }
 0x3bd   : > { %770 = vrot.lane.b32.xlu1 %v767_v34, %s1008_s27  ;;  %768 = vrot.lane.b32.xlu0 %v766_v1, %s1008_s27 }
 0x3ca   : > { %v782_v35 = vpop.permute.xlu1 %781 }
 0x3cb   : > { %v787_v42 = vrot.slane %v782_v35, %v1122_v15 }
 0x42f   : > { %v769_v36 = vpop.permute.xlu0 %768  ;;  %v771_v37 = vpop.permute.xlu1 %770 }
 0x430   : > { %v773_v38 = vsel %vm772_vm5, %v769_v36, %v771_v37  ;;  %v774_v39 = vsel %vm772_vm5, %v771_v37, %v769_v36 }
 0x431   : > { %v775_v40 = vadd.f32 %v773_v38, %v766_v1  ;;  %v776_v41 = vadd.f32 %v774_v39, %v767_v34 }
 0x433   : > { %v777_v43 = vadd.f32 %v776_v41, %v775_v40 }
 0x435   : > { %v788_v44 = vadd.f32 %v787_v42, %v777_v43 }
 0x437   : > { %790 = vst.msk [vmem:[%s300_s13] sm:$0x1] %vm789_vm6, %v788_v44 }
 0x438   : > { %952 = shalt.err (!%p949_p3)
}
 0x439   : > { %s953_s25 = scalar_lea.hbm %s1153_s20, 16  ;;  %s957_s28 = scalar_lea.hbm %s1203_s8, 32 }
 0x43a   : > { %p954_p4 = scmp.ne.s32.totalorder %s1153_s20, %s953_s25  ;;  %p958_p9 = scmp.lt.u32.totalorder %s1153_s20, %s1203_s8 }
 0x43b   : > { %p959_p10 = scmp.lt.u32.totalorder %s957_s28, %s953_s25  ;;  %p961_p12 = scmp.lt.u32.totalorder %s953_s25, %s1153_s20 }
 0x43c   : > { %p955_p7 = pnand %p954_p4, %p1096_p5 }
 0x43d   : > { %p960_p11 = por %p959_p10, %p958_p9 }
 0x43e   : > { %p956_p8 = pneg %p955_p7 }
 0x43f   : > { %p962_p13 = por %p961_p12, %p960_p11 }
 0x441   : > { %p963_p0 = pnand %p962_p13, %p956_p8 }
 0x443   : > { %966 = shalt.err (!%p963_p0)
}
 0x444   : > { %891 = dma.vmem_to_hbm [thread:$0]  (%p1096_p5), %s1155_s14, 16, %s1153_s20, %s792_s21  }
 0x445 PF: > { %p897_p1 = scmp.ge.s32.totalorder %s1001_s10, 2  ;;  %s816_s18 = sand.u32 1, %s989_s29  }
 0x446   : > { %s817_s19 = scalar_lea.sflag [#allocation4], %s816_s18 }
 0x447   : > { %p894_p2 = pnand %p897_p1, %p1100_p6 }
 0x449   : > { %984 = dma.done.wait (!%p894_p2), %s817_s19, 16  }
 0x44a   : > { %986 = vsyncadd (!%p894_p2), %s817_s19, 4294967280  ;;  %p20_p3 = scmp.ge.s32.totalorder %s1083_s12, 4   ;;  %s1206_s29 = smov %s993_s30 }
 0x44b   : > { %s1207_s30 = smov %s997_s9  ;;  %s1208_s9 = smov %s1094_s15 }
 0x44c   : > { %s1209_s10 = smov %s1083_s12  ;;  %22 = sbr.rel (!%p20_p3) target bundleno = 6 (0x6), region = 87 }
 0x453   :  { %821 = vsyncpa [#allocation4], 1 }
 0x454   :  { %823 = vsyncpa [#allocation4 + $0x1], 1 }

</bundles_post_ra>
